<compile_context>
chip_gen: v7x
topology: tpu7x:2x2x1
jax: 0.10.0
libtpu: 0.0.40
codegen_flags: <defaults>
</compile_context>

<pallas_src>
import jax
import jax.numpy as jnp
from jax.experimental import pallas as pl
from jax.experimental.pallas import tpu as pltpu

CONTRACTION_RATIO = 2
BN_EPS = 1e-5


# ----------------------------------------------------------------------------
# Kernel
# ----------------------------------------------------------------------------
def _bottleneck_kernel(halo_ref, x_ref,
                       s1_ref, b1_ref, w1_ref,
                       b2_ref, w2_ref,
                       b3_ref, wout_ref, bo_ref,
                       o_ref, cat_ref):
    C = s1_ref.shape[0]
    x_bf = x_ref[0]                                  # (C, TL) bf16, NCL tile
    TL = x_bf.shape[1]
    xf = x_bf.astype(jnp.float32)

    # ---- bn1 -> relu -> conv1 -> relu
    # (bn2 scale folded into w1 rows; conv1 bias folded into b2)
    r1 = jnp.maximum(xf * s1_ref[...] + b1_ref[...], 0.0)
    h1 = jnp.dot(w1_ref[...], r1.astype(jnp.bfloat16),
                 preferred_element_type=jnp.float32)             # (C, TL)
    h2 = jnp.maximum(h1 + b2_ref[...], 0.0)                      # (C, TL) f32

    # ---- conv2 (k=3, padding='same'): one fused (C, 3C) @ (3C, TL) matmul.
    # cat rows [0,C)   : h2[l-1]  (tap k=0)
    # cat rows [C,2C)  : h2[l]    (tap k=1)
    # cat rows [2C,3C) : h2[l+1]  (tap k=2)
    # Boundary columns come from the precomputed (already zero-masked) halo.
    halo = halo_ref[0, 0]                                        # (C, 2) f32
    lane = jax.lax.broadcasted_iota(jnp.int32, (C, TL), 1)
    prev = jnp.where(lane == 0, halo[:, 0:1], pltpu.roll(h2, 1, axis=1))
    nxt = jnp.where(lane == TL - 1, halo[:, 1:2], pltpu.roll(h2, TL - 1, axis=1))
    cat_ref[pl.ds(0, C), :] = prev.astype(jnp.bfloat16)
    cat_ref[pl.ds(C, C), :] = h2.astype(jnp.bfloat16)
    cat_ref[pl.ds(2 * C, C), :] = nxt.astype(jnp.bfloat16)

    h3 = jnp.dot(w2_ref[...], cat_ref[...],
                 preferred_element_type=jnp.float32)             # (C, TL)
    h3 = jnp.maximum(h3 + b3_ref[...], 0.0)   # bn3 scale folded in w2, conv2 bias in b3

    # ---- conv3 + skip fused: [w3 | wsk] (2C, 2C) @ [h3 ; x] (2C, TL)
    # (reuses the first 2C rows of the cat scratch; conv2 already consumed it)
    cat_ref[pl.ds(0, C), :] = h3.astype(jnp.bfloat16)
    cat_ref[pl.ds(C, C), :] = x_bf
    y = jnp.dot(wout_ref[...], cat_ref[pl.ds(0, 2 * C), :],
                preferred_element_type=jnp.float32)              # (2C, TL)
    o_ref[0] = (y + bo_ref[...]).astype(o_ref.dtype)


# ----------------------------------------------------------------------------
# Wrapper
# ----------------------------------------------------------------------------
def _pick_tl(L, N):
    cands = (2048, 1024, 512, 256, 128)
    tl = L
    for t in cands:
        if L % t == 0:
            tl = t
            break
    # keep >= 2 grid steps when possible (v7x has 2 TensorCores per chip)
    if N * (L // tl) < 2:
        for t in cands:
            if L % t == 0 and L // t >= 2:
                tl = t
                break
    return tl


def bottleneck_res_block_contract(x_ncl, params, tl=None):
    """x_ncl: (N, C, L) float (PyTorch NCL). Returns (N, 2*C, L) bfloat16."""
    N, C, L = x_ncl.shape
    Cout = CONTRACTION_RATIO * C
    (s1, b1, w1, b2f, w2, b3f, wout, bo) = params

    x_ncl = x_ncl.astype(jnp.float32)

    try:
        vmem_phys = int(pltpu.get_tpu_info().vmem_capacity_bytes)
    except Exception:
        vmem_phys = 64 << 20
    # ~96 MiB on v5e/v6e (128 MiB physical), ~48 MiB on v7x (64 MiB physical)
    vmem_cap = int(min((vmem_phys * 3) // 4, 100 << 20))

    def vmem_est(t):
        return (2 * (C * t * 2)                               # x tile bf16, double-buffered
                + 2 * (Cout * t * 2)                          # out tile bf16, double-buffered
                + 3 * C * t * 2                               # bf16 cat scratch
                + 2 * 2 * (C * C + 3 * C * C + 2 * C * Cout)  # bf16 weights, double-buffered
                + 8 * C * t * 4                               # live f32 intermediates
                + (4 << 20))                                  # compiler scratch headroom

    if tl is None:
        tl = _pick_tl(L, N)
        while tl > 128 and L % (tl // 2) == 0 and vmem_est(tl) > vmem_cap:
            tl //= 2
    assert L % tl == 0, "L must be divisible by the L-tile size"
    TL = tl
    n_l = L // TL

    # ---- halo columns for the k=3 'same' conv, fully precomputed through
    # bn1 -> relu -> conv1 -> (+b2) -> relu here so the kernel only consumes
    # two ready-made h2 boundary columns per tile (out-of-range = zero pad).
    if n_l > 1:
        left = jnp.concatenate(
            [jnp.zeros((N, C, 1), jnp.float32),
             x_ncl[:, :, TL - 1::TL][:, :, :-1]], axis=2)       # (N, C, n_l)
        right = jnp.concatenate(
            [x_ncl[:, :, TL::TL],
             jnp.zeros((N, C, 1), jnp.float32)], axis=2)        # (N, C, n_l)
        hx = jnp.stack([left, right], axis=-1)                  # (N, C, n_l, 2)
        s1c = s1.reshape(1, C, 1, 1)
        b1c = b1.reshape(1, C, 1, 1)
        b2c = b2f.reshape(1, C, 1, 1)
        rh = jnp.maximum(hx * s1c + b1c, 0.0)
        hh = jnp.einsum("oi,nilt->nolt", w1, rh.astype(jnp.bfloat16),
                        preferred_element_type=jnp.float32)
        h2h = jnp.maximum(hh + b2c, 0.0)                        # (N, C, n_l, 2)
        li = jnp.arange(n_l)
        pad_mask = jnp.stack([li > 0, li < n_l - 1], axis=-1).astype(jnp.float32)
        h2h = h2h * pad_mask[None, None, :, :]
        halo = jnp.transpose(h2h, (0, 2, 1, 3))                 # (N, n_l, C, 2)
    else:
        halo = jnp.zeros((N, 1, C, 2), jnp.float32)

    x_bf = x_ncl.astype(jnp.bfloat16)                           # bf16 HBM boundary

    const2 = lambda n, l: (0, 0)
    if C >= 256:
        # constants never change across the grid: single VMEM copy saves
        # double-buffer space on big weights (material on v7x's 64 MiB).
        const_spec = lambda shape: pl.BlockSpec(shape, const2,
                                                pipeline_mode=pl.Buffered(1))
    else:
        const_spec = lambda shape: pl.BlockSpec(shape, const2)

    flops = 16 * N * L * C * C                 # conv1 + conv2(3C) + fused conv3/skip(2C)
    bytes_accessed = (2 * N * C * L + 2 * N * Cout * L
                      + 4 * N * n_l * C * 2
                      + 2 * (C * C + 3 * C * C + 2 * C * Cout) + 4 * 6 * C)
    cost = pl.CostEstimate(flops=flops, transcendentals=0,
                           bytes_accessed=bytes_accessed)

    vmem_limit = int(min(max(vmem_est(TL), 32 << 20), vmem_cap))

    out = pl.pallas_call(
        _bottleneck_kernel,
        out_shape=jax.ShapeDtypeStruct((N, Cout, L), jnp.bfloat16),
        grid_spec=pltpu.PrefetchScalarGridSpec(
            num_scalar_prefetch=0,
            grid=(N, n_l),
            in_specs=[
                pl.BlockSpec((1, 1, C, 2), lambda n, l: (n, l, 0, 0)),  # h2 halo cols
                pl.BlockSpec((1, C, TL), lambda n, l: (n, 0, l)),       # x tile (bf16)
                const_spec((C, 1)),          # bn1 scale
                const_spec((C, 1)),          # bn1 shift
                const_spec((C, C)),          # conv1 weight * bn2 scale (bf16)
                const_spec((C, 1)),          # bn2 shift (+ conv1 bias)
                const_spec((C, 3 * C)),      # conv2 weight * bn3 scale (bf16)
                const_spec((C, 1)),          # bn3 shift (+ conv2 bias)
                const_spec((Cout, 2 * C)),   # [conv3 | skip] fused weight (bf16)
                const_spec((Cout, 1)),       # conv3 + skip bias combined
            ],
            out_specs=pl.BlockSpec((1, Cout, TL), lambda n, l: (n, 0, l)),
            scratch_shapes=[pltpu.VMEM((3 * C, TL), jnp.bfloat16)],
        ),
        compiler_params=pltpu.CompilerParams(
            dimension_semantics=("parallel", "parallel"),
            vmem_limit_bytes=vmem_limit),
        cost_estimate=cost,
    )(halo, x_bf, s1, b1, w1, b2f, w2, b3f, wout, bo)
    return out


# ----------------------------------------------------------------------------
# Parameters (PyTorch-shaped) + folding into the kernel layout
# ----------------------------------------------------------------------------
def make_raw_params(key, C):
    """Deterministic synthetic parameters with the PyTorch module's shapes."""
    Cout = CONTRACTION_RATIO * C
    ks = iter(jax.random.split(key, 20))

    def bn():
        gamma = 1.0 + 0.1 * jax.random.normal(next(ks), (C,), jnp.float32)
        beta = 0.1 * jax.random.normal(next(ks), (C,), jnp.float32)
        mean = 0.1 * jax.random.normal(next(ks), (C,), jnp.float32)
        var = 1.0 + 0.1 * jnp.abs(jax.random.normal(next(ks), (C,), jnp.float32))
        return gamma, beta, mean, var

    bn1, bn2, bn3 = bn(), bn(), bn()
    w1 = 0.1 * jax.random.normal(next(ks), (C, C, 1), jnp.float32)
    cb1 = 0.1 * jax.random.normal(next(ks), (C,), jnp.float32)
    w2 = 0.1 * jax.random.normal(next(ks), (C, C, 3), jnp.float32)
    cb2 = 0.1 * jax.random.normal(next(ks), (C,), jnp.float32)
    w3 = 0.1 * jax.random.normal(next(ks), (Cout, C, 1), jnp.float32)
    cb3 = 0.1 * jax.random.normal(next(ks), (Cout,), jnp.float32)
    wsk = 0.1 * jax.random.normal(next(ks), (Cout, C, 1), jnp.float32)
    cbs = 0.1 * jax.random.normal(next(ks), (Cout,), jnp.float32)
    return dict(bn1=bn1, bn2=bn2, bn3=bn3, w1=w1, cb1=cb1, w2=w2, cb2=cb2,
                w3=w3, cb3=cb3, wsk=wsk, cbs=cbs)


def fold_params(raw):
    """Fold eval-mode BN into scale/shift, conv biases into the next BN shift,
    bn2/bn3 scales into the conv1/conv2 weight rows (f32, then one bf16 cast),
    concat conv2 taps into (C, 3C) and [conv3 | skip] into (2C, 2C)."""
    def bn_fold(gamma, beta, mean, var):
        scale = gamma / jnp.sqrt(var + BN_EPS)
        return scale, beta - mean * scale

    s1, b1 = bn_fold(*raw["bn1"])
    s2, b2 = bn_fold(*raw["bn2"])
    s3, b3 = bn_fold(*raw["bn3"])
    C = s1.shape[0]

    b2f = b2 + s2 * raw["cb1"]            # conv1 bias folded into bn2 shift
    b3f = b3 + s3 * raw["cb2"]            # conv2 bias folded into bn3 shift
    bo = raw["cb3"] + raw["cbs"]          # conv3 + skip biases combined

    w1 = (s2[:, None] * raw["w1"][:, :, 0]).astype(jnp.bfloat16)          # (C, C)
    w2cat = jnp.transpose(raw["w2"], (0, 2, 1)).reshape(C, 3 * C)
    w2 = (s3[:, None] * w2cat).astype(jnp.bfloat16)                       # (C, 3C)
    wout = jnp.concatenate([raw["w3"][:, :, 0], raw["wsk"][:, :, 0]],
                           axis=1).astype(jnp.bfloat16)                   # (2C, 2C)

    col = lambda v: v.reshape(-1, 1).astype(jnp.float32)
    return (col(s1), col(b1), w1, col(b2f), w2, col(b3f), wout, col(bo))


# ----------------------------------------------------------------------------
# Pure-JAX reference (NCL, mirrors PyTorch eval-mode semantics, bf16 matmuls)
# ----------------------------------------------------------------------------
def reference(x, raw):
    def bn_fold(gamma, beta, mean, var):
        scale = gamma / jnp.sqrt(var + BN_EPS)
        return scale[:, None], (beta - mean * scale)[:, None]

    bf = jnp.bfloat16
    dot = lambda w, h: jnp.einsum("oi,nil->nol", w.astype(bf), h.astype(bf),
                                  preferred_element_type=jnp.float32)

    s1, b1 = bn_fold(*raw["bn1"])
    s2, b2 = bn_fold(*raw["bn2"])
    s3, b3 = bn_fold(*raw["bn3"])

    h = jnp.maximum(x * s1 + b1, 0.0)
    h = dot(raw["w1"][:, :, 0], h) + raw["cb1"][:, None]
    h = jnp.maximum(h * s2 + b2, 0.0)
    hp = jnp.pad(h, ((0, 0), (0, 0), (1, 1)))
    h = (dot(raw["w2"][:, :, 0], hp[:, :, :-2])
         + dot(raw["w2"][:, :, 1], hp[:, :, 1:-1])
         + dot(raw["w2"][:, :, 2], hp[:, :, 2:]) + raw["cb2"][:, None])
    h = jnp.maximum(h * s3 + b3, 0.0)
    y = dot(raw["w3"][:, :, 0], h) + raw["cb3"][:, None]
    z = dot(raw["wsk"][:, :, 0], x) + raw["cbs"][:, None]
    return y + z


if __name__ == "__main__":
    N, C, L = 2, 8, 256                      # small NCL test shape (in_features=8)
    key = jax.random.PRNGKey(0)
    kx, kp = jax.random.split(key)
    x = jax.random.normal(kx, (N, C, L), jnp.float32)
    raw = make_raw_params(kp, C)
    params = fold_params(raw)

    fn = jax.jit(bottleneck_res_block_contract, static_argnames=("tl",))
    out = fn(x, params, tl=128)              # grid = (2 batch, 2 L-tiles): exercises halo
    out = jax.block_until_ready(out)

    ref = reference(x, raw)
    assert out.shape == (N, CONTRACTION_RATIO * C, L)
    assert out.dtype == jnp.bfloat16
    err = float(jnp.max(jnp.abs(out.astype(jnp.float32) - ref)))
    assert err < 3e-2, "mismatch vs reference: max abs err = %g" % err

    print("KERNEL_OK")
</pallas_src>

<mosaic_0001>
module attributes {stable_mosaic.version = 11 : i64} {
  func.func @_bottleneck_kernel(%arg0: i32, %arg1: i32, %arg2: memref<1x1x8x2xf32, #tpu.memory_space<vmem>>, %arg3: memref<1x8x128xbf16, #tpu.memory_space<vmem>>, %arg4: memref<8x1xf32, #tpu.memory_space<vmem>>, %arg5: memref<8x1xf32, #tpu.memory_space<vmem>>, %arg6: memref<8x8xbf16, #tpu.memory_space<vmem>>, %arg7: memref<8x1xf32, #tpu.memory_space<vmem>>, %arg8: memref<8x24xbf16, #tpu.memory_space<vmem>>, %arg9: memref<8x1xf32, #tpu.memory_space<vmem>>, %arg10: memref<16x16xbf16, #tpu.memory_space<vmem>>, %arg11: memref<16x1xf32, #tpu.memory_space<vmem>>, %arg12: memref<1x16x128xbf16, #tpu.memory_space<vmem>>, %arg13: memref<24x128xbf16, #tpu.memory_space<vmem>>) attributes {dimension_semantics = [#tpu.dimension_semantics<parallel>, #tpu.dimension_semantics<parallel>], iteration_bounds = array<i64: 2, 2>, scalar_prefetch = 0 : i64, scratch_operands = 1 : i64, tpu.core_type = #tpu.core_type<tc>, window_params = [{transform_indices = @transform_0, window_bounds = array<i64: 1, 1, 8, 2>}, {transform_indices = @transform_1, window_bounds = array<i64: 1, 8, 128>}, {pipeline_mode = #tpu.pipeline_mode<synchronous>, transform_indices = @transform_2, window_bounds = array<i64: 8, 1>}, {pipeline_mode = #tpu.pipeline_mode<synchronous>, transform_indices = @transform_3, window_bounds = array<i64: 8, 1>}, {pipeline_mode = #tpu.pipeline_mode<synchronous>, transform_indices = @transform_4, window_bounds = array<i64: 8, 8>}, {pipeline_mode = #tpu.pipeline_mode<synchronous>, transform_indices = @transform_5, window_bounds = array<i64: 8, 1>}, {pipeline_mode = #tpu.pipeline_mode<synchronous>, transform_indices = @transform_6, window_bounds = array<i64: 8, 24>}, {pipeline_mode = #tpu.pipeline_mode<synchronous>, transform_indices = @transform_7, window_bounds = array<i64: 8, 1>}, {pipeline_mode = #tpu.pipeline_mode<synchronous>, transform_indices = @transform_8, window_bounds = array<i64: 16, 16>}, {pipeline_mode = #tpu.pipeline_mode<synchronous>, transform_indices = @transform_9, window_bounds = array<i64: 16, 1>}, {transform_indices = @transform_10, window_bounds = array<i64: 1, 16, 128>}]} {
    %c0 = arith.constant 0 : index
    %c0_0 = arith.constant 0 : index
    %c0_1 = arith.constant 0 : index
    %0 = vector.load %arg3[%c0, %c0_0, %c0_1] : memref<1x8x128xbf16, #tpu.memory_space<vmem>>, vector<1x8x128xbf16>
    %1 = vector.shape_cast %0 : vector<1x8x128xbf16> to vector<8x128xbf16>
    %2 = arith.extf %1 : vector<8x128xbf16> to vector<8x128xf32>
    %c0_2 = arith.constant 0 : index
    %c0_3 = arith.constant 0 : index
    %3 = vector.load %arg4[%c0_2, %c0_3] : memref<8x1xf32, #tpu.memory_space<vmem>>, vector<8x1xf32>
    %4 = vector.broadcast %3 : vector<8x1xf32> to vector<8x128xf32>
    %5 = arith.mulf %2, %4 : vector<8x128xf32>
    %c0_4 = arith.constant 0 : index
    %c0_5 = arith.constant 0 : index
    %6 = vector.load %arg5[%c0_4, %c0_5] : memref<8x1xf32, #tpu.memory_space<vmem>>, vector<8x1xf32>
    %7 = vector.broadcast %6 : vector<8x1xf32> to vector<8x128xf32>
    %8 = arith.addf %5, %7 : vector<8x128xf32>
    %cst = arith.constant 0.000000e+00 : f32
    %9 = vector.broadcast %cst : f32 to vector<8x128xf32>
    %10 = arith.maximumf %8, %9 : vector<8x128xf32>
    %c0_6 = arith.constant 0 : index
    %c0_7 = arith.constant 0 : index
    %11 = vector.load %arg6[%c0_6, %c0_7] : memref<8x8xbf16, #tpu.memory_space<vmem>>, vector<8x8xbf16>
    %12 = arith.truncf %10 : vector<8x128xf32> to vector<8x128xbf16>
    %cst_8 = arith.constant dense<0.000000e+00> : vector<8x128xf32>
    %13 = tpu.matmul %11, %12, %cst_8 {dimension_numbers = #tpu.dot_dimension_numbers<[1], [0], [0], [1], [0, 0, 1, 1], [], []>} : vector<8x8xbf16>, vector<8x128xbf16>, vector<8x128xf32> -> vector<8x128xf32>
    %c0_9 = arith.constant 0 : index
    %c0_10 = arith.constant 0 : index
    %14 = vector.load %arg7[%c0_9, %c0_10] : memref<8x1xf32, #tpu.memory_space<vmem>>, vector<8x1xf32>
    %15 = vector.broadcast %14 : vector<8x1xf32> to vector<8x128xf32>
    %16 = arith.addf %13, %15 : vector<8x128xf32>
    %cst_11 = arith.constant 0.000000e+00 : f32
    %17 = vector.broadcast %cst_11 : f32 to vector<8x128xf32>
    %18 = arith.maximumf %16, %17 : vector<8x128xf32>
    %c0_12 = arith.constant 0 : index
    %c0_13 = arith.constant 0 : index
    %c0_14 = arith.constant 0 : index
    %c0_15 = arith.constant 0 : index
    %19 = vector.load %arg2[%c0_12, %c0_13, %c0_14, %c0_15] : memref<1x1x8x2xf32, #tpu.memory_space<vmem>>, vector<1x1x8x2xf32>
    %20 = vector.shape_cast %19 : vector<1x1x8x2xf32> to vector<8x2xf32>
    %21 = tpu.iota {dimensions = array<i32: 1>} : vector<8x128xi32>
    %c0_i32 = arith.constant 0 : i32
    %22 = vector.broadcast %c0_i32 : i32 to vector<8x128xi32>
    %23 = arith.cmpi eq, %21, %22 : vector<8x128xi32>
    %24 = vector.extract_strided_slice %20 {offsets = [0, 0], sizes = [8, 1], strides = [1, 1]} : vector<8x2xf32> to vector<8x1xf32>
    %c1_i32 = arith.constant 1 : i32
    %25 = tpu.dynamic_rotate %18 by %c1_i32 dim 1 : vector<8x128xf32>, i32 -> vector<8x128xf32>
    %26 = vector.shape_cast %24 : vector<8x1xf32> to vector<8x1xf32>
    %27 = vector.broadcast %26 : vector<8x1xf32> to vector<8x128xf32>
    %28 = arith.select %23, %27, %25 : vector<8x128xi1>, vector<8x128xf32>
    %c127_i32 = arith.constant 127 : i32
    %29 = vector.broadcast %c127_i32 : i32 to vector<8x128xi32>
    %30 = arith.cmpi eq, %21, %29 : vector<8x128xi32>
    %31 = vector.extract_strided_slice %20 {offsets = [0, 1], sizes = [8, 1], strides = [1, 1]} : vector<8x2xf32> to vector<8x1xf32>
    %c127_i32_16 = arith.constant 127 : i32
    %32 = tpu.dynamic_rotate %18 by %c127_i32_16 dim 1 : vector<8x128xf32>, i32 -> vector<8x128xf32>
    %33 = vector.shape_cast %31 : vector<8x1xf32> to vector<8x1xf32>
    %34 = vector.broadcast %33 : vector<8x1xf32> to vector<8x128xf32>
    %35 = arith.select %30, %34, %32 : vector<8x128xi1>, vector<8x128xf32>
    %36 = arith.truncf %28 : vector<8x128xf32> to vector<8x128xbf16>
    %c0_17 = arith.constant 0 : index
    %c0_18 = arith.constant 0 : index
    %37 = vector.load %arg13[%c0_17, %c0_18] : memref<24x128xbf16, #tpu.memory_space<vmem>>, vector<8x128xbf16>
    tpu.vector_store %arg13[%c0_17, %c0_18], %36 {strides = array<i32>} : memref<24x128xbf16, #tpu.memory_space<vmem>>, vector<8x128xbf16>,
    %38 = arith.truncf %18 : vector<8x128xf32> to vector<8x128xbf16>
    %c8 = arith.constant 8 : index
    %c0_19 = arith.constant 0 : index
    %39 = vector.load %arg13[%c8, %c0_19] : memref<24x128xbf16, #tpu.memory_space<vmem>>, vector<8x128xbf16>
    tpu.vector_store %arg13[%c8, %c0_19], %38 {strides = array<i32>} : memref<24x128xbf16, #tpu.memory_space<vmem>>, vector<8x128xbf16>,
    %40 = arith.truncf %35 : vector<8x128xf32> to vector<8x128xbf16>
    %c16 = arith.constant 16 : index
    %c0_20 = arith.constant 0 : index
    %41 = vector.load %arg13[%c16, %c0_20] : memref<24x128xbf16, #tpu.memory_space<vmem>>, vector<8x128xbf16>
    tpu.vector_store %arg13[%c16, %c0_20], %40 {strides = array<i32>} : memref<24x128xbf16, #tpu.memory_space<vmem>>, vector<8x128xbf16>,
    %c0_21 = arith.constant 0 : index
    %c0_22 = arith.constant 0 : index
    %42 = vector.load %arg8[%c0_21, %c0_22] : memref<8x24xbf16, #tpu.memory_space<vmem>>, vector<8x24xbf16>
    %c0_23 = arith.constant 0 : index
    %c0_24 = arith.constant 0 : index
    %43 = vector.load %arg13[%c0_23, %c0_24] : memref<24x128xbf16, #tpu.memory_space<vmem>>, vector<24x128xbf16>
    %cst_25 = arith.constant dense<0.000000e+00> : vector<8x128xf32>
    %44 = tpu.matmul %42, %43, %cst_25 {dimension_numbers = #tpu.dot_dimension_numbers<[1], [0], [0], [1], [0, 0, 1, 1], [], []>} : vector<8x24xbf16>, vector<24x128xbf16>, vector<8x128xf32> -> vector<8x128xf32>
    %c0_26 = arith.constant 0 : index
    %c0_27 = arith.constant 0 : index
    %45 = vector.load %arg9[%c0_26, %c0_27] : memref<8x1xf32, #tpu.memory_space<vmem>>, vector<8x1xf32>
    %46 = vector.broadcast %45 : vector<8x1xf32> to vector<8x128xf32>
    %47 = arith.addf %44, %46 : vector<8x128xf32>
    %cst_28 = arith.constant 0.000000e+00 : f32
    %48 = vector.broadcast %cst_28 : f32 to vector<8x128xf32>
    %49 = arith.maximumf %47, %48 : vector<8x128xf32>
    %50 = arith.truncf %49 : vector<8x128xf32> to vector<8x128xbf16>
    %c0_29 = arith.constant 0 : index
    %c0_30 = arith.constant 0 : index
    %51 = vector.load %arg13[%c0_29, %c0_30] : memref<24x128xbf16, #tpu.memory_space<vmem>>, vector<8x128xbf16>
    tpu.vector_store %arg13[%c0_29, %c0_30], %50 {strides = array<i32>} : memref<24x128xbf16, #tpu.memory_space<vmem>>, vector<8x128xbf16>,
    %c8_31 = arith.constant 8 : index
    %c0_32 = arith.constant 0 : index
    %52 = vector.load %arg13[%c8_31, %c0_32] : memref<24x128xbf16, #tpu.memory_space<vmem>>, vector<8x128xbf16>
    tpu.vector_store %arg13[%c8_31, %c0_32], %1 {strides = array<i32>} : memref<24x128xbf16, #tpu.memory_space<vmem>>, vector<8x128xbf16>,
    %c0_33 = arith.constant 0 : index
    %c0_34 = arith.constant 0 : index
    %53 = vector.load %arg10[%c0_33, %c0_34] : memref<16x16xbf16, #tpu.memory_space<vmem>>, vector<16x16xbf16>
    %c0_35 = arith.constant 0 : index
    %c0_36 = arith.constant 0 : index
    %54 = vector.load %arg13[%c0_35, %c0_36] : memref<24x128xbf16, #tpu.memory_space<vmem>>, vector<16x128xbf16>
    %cst_37 = arith.constant dense<0.000000e+00> : vector<16x128xf32>
    %55 = tpu.matmul %53, %54, %cst_37 {dimension_numbers = #tpu.dot_dimension_numbers<[1], [0], [0], [1], [0, 0, 1, 1], [], []>} : vector<16x16xbf16>, vector<16x128xbf16>, vector<16x128xf32> -> vector<16x128xf32>
    %c0_38 = arith.constant 0 : index
    %c0_39 = arith.constant 0 : index
    %56 = vector.load %arg11[%c0_38, %c0_39] : memref<16x1xf32, #tpu.memory_space<vmem>>, vector<16x1xf32>
    %57 = vector.broadcast %56 : vector<16x1xf32> to vector<16x128xf32>
    %58 = arith.addf %55, %57 : vector<16x128xf32>
    %59 = arith.truncf %58 : vector<16x128xf32> to vector<16x128xbf16>
    %c0_40 = arith.constant 0 : index
    %c0_41 = arith.constant 0 : index
    %c0_42 = arith.constant 0 : index
    %60 = vector.load %arg12[%c0_40, %c0_41, %c0_42] : memref<1x16x128xbf16, #tpu.memory_space<vmem>>, vector<1x16x128xbf16>
    %61 = vector.shape_cast %60 : vector<1x16x128xbf16> to vector<16x128xbf16>
    %62 = vector.shape_cast %59 : vector<16x128xbf16> to vector<1x16x128xbf16>
    tpu.vector_store %arg12[%c0_40, %c0_41, %c0_42], %62 {strides = array<i32>} : memref<1x16x128xbf16, #tpu.memory_space<vmem>>, vector<1x16x128xbf16>,
    return
  }
  func.func @transform_0(%arg0: i32, %arg1: i32) -> (i32, i32, i32, i32) {
    %c0_i32 = arith.constant 0 : i32
    %c0_i32_0 = arith.constant 0 : i32
    %c0_i32_1 = arith.constant 0 : i32
    return %arg0, %arg1, %c0_i32, %c0_i32_0 : i32, i32, i32, i32
  }
  func.func @transform_1(%arg0: i32, %arg1: i32) -> (i32, i32, i32) {
    %c0_i32 = arith.constant 0 : i32
    %c0_i32_0 = arith.constant 0 : i32
    return %arg0, %c0_i32, %arg1 : i32, i32, i32
  }
  func.func @transform_2(%arg0: i32, %arg1: i32) -> (i32, i32) {
    %c0_i32 = arith.constant 0 : i32
    %c0_i32_0 = arith.constant 0 : i32
    %c0_i32_1 = arith.constant 0 : i32
    return %c0_i32, %c0_i32_0 : i32, i32
  }
  func.func @transform_3(%arg0: i32, %arg1: i32) -> (i32, i32) {
    %c0_i32 = arith.constant 0 : i32
    %c0_i32_0 = arith.constant 0 : i32
    %c0_i32_1 = arith.constant 0 : i32
    return %c0_i32, %c0_i32_0 : i32, i32
  }
  func.func @transform_4(%arg0: i32, %arg1: i32) -> (i32, i32) {
    %c0_i32 = arith.constant 0 : i32
    %c0_i32_0 = arith.constant 0 : i32
    %c0_i32_1 = arith.constant 0 : i32
    return %c0_i32, %c0_i32_0 : i32, i32
  }
  func.func @transform_5(%arg0: i32, %arg1: i32) -> (i32, i32) {
    %c0_i32 = arith.constant 0 : i32
    %c0_i32_0 = arith.constant 0 : i32
    %c0_i32_1 = arith.constant 0 : i32
    return %c0_i32, %c0_i32_0 : i32, i32
  }
  func.func @transform_6(%arg0: i32, %arg1: i32) -> (i32, i32) {
    %c0_i32 = arith.constant 0 : i32
    %c0_i32_0 = arith.constant 0 : i32
    %c0_i32_1 = arith.constant 0 : i32
    return %c0_i32, %c0_i32_0 : i32, i32
  }
  func.func @transform_7(%arg0: i32, %arg1: i32) -> (i32, i32) {
    %c0_i32 = arith.constant 0 : i32
    %c0_i32_0 = arith.constant 0 : i32
    %c0_i32_1 = arith.constant 0 : i32
    return %c0_i32, %c0_i32_0 : i32, i32
  }
  func.func @transform_8(%arg0: i32, %arg1: i32) -> (i32, i32) {
    %c0_i32 = arith.constant 0 : i32
    %c0_i32_0 = arith.constant 0 : i32
    %c0_i32_1 = arith.constant 0 : i32
    return %c0_i32, %c0_i32_0 : i32, i32
  }
  func.func @transform_9(%arg0: i32, %arg1: i32) -> (i32, i32) {
    %c0_i32 = arith.constant 0 : i32
    %c0_i32_0 = arith.constant 0 : i32
    %c0_i32_1 = arith.constant 0 : i32
    return %c0_i32, %c0_i32_0 : i32, i32
  }
  func.func @transform_10(%arg0: i32, %arg1: i32) -> (i32, i32, i32) {
    %c0_i32 = arith.constant 0 : i32
    %c0_i32_0 = arith.constant 0 : i32
    return %arg0, %c0_i32, %arg1 : i32, i32, i32
  }
}

</mosaic_0001>

<bundles_post_ra>
// kernel: bottleneck_res_block_contract.1
= control target key start
LH: loop header
LB: loop body
LE: loop exit
PB: predicated region body
PF: predicated region fallthrough
CT: control target
= control target key end

     0   :  { %s1275_s0 = inlined_call_operand.vmem [shape: f32[2,2,8,2], index: 0, kind: input, shape index: {}]   ;;  %s1276_s1 = inlined_call_operand.vmem [shape: bf16[2,8,256], index: 1, kind: input, shape index: {}]   ;;  %s1277_s2 = inlined_call_operand.vmem [shape: f32[8,1], index: 2, kind: input, shape index: {}]   ;;  %s1278_s3 = inlined_call_operand.vmem [shape: f32[8,1], index: 3, kind: input, shape index: {}]   ;;  %s1279_s4 = inlined_call_operand.vmem [shape: bf16[8,8], index: 4, kind: input, shape index: {}]   ;;  %s1280_s5 = inlined_call_operand.vmem [shape: f32[8,1], index: 5, kind: input, shape index: {}]   ;;  %s1281_s6 = inlined_call_operand.vmem [shape: bf16[8,24], index: 6, kind: input, shape index: {}]   ;;  %s1282_s7 = inlined_call_operand.vmem [shape: f32[8,1], index: 7, kind: input, shape index: {}]   ;;  %s1283_s8 = inlined_call_operand.vmem [shape: bf16[16,16], index: 8, kind: input, shape index: {}]   ;;  %s1284_s9 = inlined_call_operand.vmem [shape: f32[16,1], index: 9, kind: input, shape index: {}]   ;;  %s1285_s10 = inlined_call_operand.hbm [shape: bf16[2,16,256], index: 10, kind: output, shape index: {}]  }
   0x1   :  { %1289 = sst [smem:[#allocation9_spill]] %s1277_s2 }
   0x2   :  { %1290 = sst [smem:[#allocation10_spill]] %s1278_s3 }
   0x3   :  { %15 = vsyncpa [#allocation4], 0 }
   0x4   :  { %17 = vsyncpa [#allocation4 + $0x1], 0  ;;  %s1093_s13 = smov 0   ;;  %s1095_s14 = smov 0  }
   0x5   :  { %s1097_s15 = smov 0   ;;  %s1099_s16 = smov 0  }
   0x6   :  { %s1101_s17 = smov 0   ;;  %s1103_s18 = smov 0  }
   0x7   :  { %s1105_s19 = smov 0   ;;  %s1107_s20 = smov 0  }
   0x8 LB: > { %1291 = sst [smem:[#allocation6_spill]] %s1022_s19  ;;  %s781_s21 = sadd.s32 4294967295, %s1026_s20   ;;  %s1026_s20 = sphi %s1107_s20, %s23_s20   ;;  %s1022_s19 = sphi %s1105_s19, %s1300_s19   ;;  %s1018_s18 = sphi %s1103_s18, %s1305_s18   ;;  %s1014_s17 = sphi %s1101_s17, %s1298_s17   ;;  %s1010_s16 = sphi %s1099_s16, %s1304_s16   ;;  %s1006_s15 = sphi %s1097_s15, %s1303_s15   ;;  %s1002_s14 = sphi %s1095_s14, %s1302_s14   ;;  %s998_s13 = sphi %s1093_s13, %s1301_s13  }
   0x9   : > { %s782_s22 = sadd.s32 4294967294, %s1026_s20   ;;  %s32_s23 = sadd.s32 1, %s1018_s18 }
   0xa   : > { %p33_p0 = scmp.ge.s32.totalorder %s32_s23, 2  ;;  %s35_s24 = sadd.s32 1, %s1022_s19 }
   0xb   : > { %p278_p1 = scmp.ne.s32.totalorder %s1006_s15, %s1002_s14  ;;  %p279_p2 = scmp.eq.s32.totalorder %s781_s21, 3 }
   0xc   : > { %s1307_s23 = smov (%p33_p0, %s32_s23), 0  ;;  %s1309_s24 = smov (!%p33_p0, %s35_s24), %s1022_s19 }
   0xd   : > { %1292 = sst [smem:[#allocation7_spill]] %s1307_s23  ;;  %s264_s25 = ssub.s32 %s1018_s18, %s1307_s23 }
   0xe   : > { %p1144_p3 = por %p279_p2, %p278_p1  ;;  %p37_p4 = scmp.ge.s32.totalorder %s1309_s24, 2 }
   0xf   : > { %p284_p5 = scmp.ne.s32.totalorder %s1002_s14, %s998_s13  ;;  %p285_p6 = scmp.eq.s32.totalorder %s782_s22, 3 }
  0x10   : > { %p785_p7 = scmp.ge.s32.totalorder %s1026_s20, 1  ;;  %s1311_s24 = smov (%p37_p4, %s1309_s24), 0 }
  0x11   : > { %1294 = sst [smem:[#allocation8_spill]] %s1311_s24  ;;  %p1153_p8 = por %p285_p6, %p284_p5 }
  0x12   : > { %p349_p9 = scmp.lt.s32.totalorder %s1026_s20, 5  ;;  %s263_s28 = ssub.s32 %s1022_s19, %s1311_s24 }
  0x13   : > { %s268_s29 = sadd.s32 1, %s1006_s15  ;;  %s265_s30 = sor.u32 %s264_s25, %s263_s28 }
  0x14   : > { %p350_p10 = pnand %p785_p7, %p349_p9  ;;  %p266_p11 = scmp.eq.s32.totalorder %s265_s30, 0 }
  0x15   : > { %s1296_s2 = sld [smem:[#allocation9_spill]] (!%p350_p10)  ;;  %v1028_v1 = vmov (!%p350_p10), 0   ;;  %s1297_s3 = sld [smem:[#allocation10_spill]] (!%p350_p10)  ;;  %v1029_v3 = vmov (!%p350_p10), 0.0   ;;  %vm1030_vm0 = vmmov (!%p350_p10), 0   ;;  %v434_v4 = vld [vmem:[%s1280_s5] sm:$0xff] (!%p350_p10)  ;;  %v490_v27 = vlaneseq (!%p350_p10) }
  0x16   : > { %s1162_s11 = scalar_select %p266_p11, %s1006_s15, %s268_s29  }
  0x17   : > { %353 = sbr.rel (%p350_p10) target bundleno = 983 (0x3d7), region = 60  ;;  %924 = vset.pattern.permute.xlu0 (!%p350_p10), %v1028_v1  ;;  %925 = vset.pattern.permute.xlu1 (!%p350_p10), %v1028_v1  ;;  %p398_p12 = scmp.lt.s32.totalorder (!%p350_p10), %s1014_s17, 1  ;;  %v1031_v5 = vmov (!%p350_p10), 1   ;;  %vm444_vm1 = vcmask (!%p350_p10), 1043456   ;;  %v432_v16 = vld [vmem:[%s1279_s4] sm:$0xf] (!%p350_p10) }
  0x18   : > { %p400_p13 = scmp.lt.s32.totalorder (!%p350_p10), %s1010_s16, 1  ;;  %824 = vmatprep.subr.bf16.mxu0 (!%p350_p10), %v1029_v3  ;;  %830 = vmatprep.subr.bf16.mxu1 (!%p350_p10), %v1029_v3  ;;  %vm440_vm2 = vcmask (!%p350_p10), 64512   ;;  %s1032_s19 = smov (!%p350_p10), 1   ;;  %v589_v24 = vld [vmem:[%s1284_s9] sm:$0xff] (!%p350_p10)  ;;  %v590_v25 = vld [vmem:[%s1284_s9 + $0x8] sm:$0xff] (!%p350_p10)  ;;  %v491_v28 = vand.u32 (!%p350_p10), 127, %v490_v27 }
  0x19   : > { %826 = vmatprep.mubr.msk.bf16.mxu0 (!%p350_p10), %vm1030_vm0, %v1029_v3  ;;  %834 = vmatprep.mubr.msk.bf16.mxu1 (!%p350_p10), %vm1030_vm0, %v1029_v3  ;;  %s1033_s23 = smov (!%p350_p10), 127   ;;  %v519_v26 = vld [vmem:[%s1282_s7] sm:$0xff] (!%p350_p10)  ;;  %vm534_vm5 = vcmask (!%p350_p10), 195584   ;;  %vm612_vm6 = vcmask (!%p350_p10), 130048  }
  0x1a   : > { %437 = vperm.xlu1 (!%p350_p10), %925, %v434_v4   ;;  %vm492_vm3 = vcmp.eq.s32.totalorder (!%p350_p10), %v491_v28, 0  ;;  %vm501_vm4 = vcmp.eq.s32.totalorder (!%p350_p10), %v491_v28, 127  ;;  %v515_v40 = vld [vmem:[%s1281_s6] sm:$0xf] (!%p350_p10) }
  0x1b   : > { %v417_v0 = vld [vmem:[%s1296_s2] sm:$0xff] (!%p350_p10)  ;;  %s1034_s2 = smov (!%p350_p10), [#allocation3]  }
  0x1c   : > { %420 = vperm.xlu0 (!%p350_p10), %924, %v417_v0   ;;  %v424_v2 = vld [vmem:[%s1297_s3] sm:$0xff] (!%p350_p10) }
  0x1d   : > { %v931_v50 = vld [vmem:[%s1283_s8] sm:$0xff] (!%p350_p10)  }
  0x1e   : > { %s399_s25 = scalar_select %p398_p12, %s1014_s17, 1 }
  0x1f   : > { %s401_s28 = scalar_select %p400_p13, %s1010_s16, 1 }
  0x20   : > { %427 = vperm.xlu0 %924, %v424_v2   ;;  %s787_s29 = sshll.u32 %s399_s25, 1 }
  0x21   : > { %s403_s24 = sadd.s32 %s787_s29, %s401_s28  ;;  %s801_s29 = sshll.u32 %s1014_s17, 2 }
  0x22   : > { %s788_s21 = sshll.u32 %s403_s24, 3  ;;  %s790_s25 = sshll.u32 %s403_s24, 2 }
  0x23   : > { %s405_s3 = scalar_lea.vmem %s1275_s0, %s788_s21  ;;  %s413_s28 = scalar_lea.vmem %s1276_s1, %s790_s25 }
  0x24   : > { %926 = vset.pattern.permute.xlu0 %v1031_v5  ;;  %v489_v6 = vld [vmem:[%s405_s3] sm:$0xff]  ;;  %s679_s24 = sadd.s32 %s1010_s16, %s801_s29  ;;  %s936_s3 = sshll.u32 %s1034_s2, 4  ;;  %s937_s3 = int_to_ptr.vmem [resolvable:$false] %s936_s3 }
  0x25   : > { %505 = vperm.xlu0 %926, %v489_v6   ;;  %497 = vperm.xlu1 %925, %v489_v6   ;;  %v415_v7 = vld [vmem:[%s413_s28] sm:$0xf]  ;;  %s802_s21 = sshll.u32 %s679_s24, 6 }
  0x26   : > { %v416_v8 = vunpack.c.l.bf16 %v415_v7  ;;  %s1221_s16 = scalar_lea.hbm %s1285_s10, %s802_s21 }
  0x29   : > { %927 = vset.pattern.permute.xlu0 %v1028_v1 }
  0x2a   : > { %522 = vperm.xlu0 %927, %v519_v26  }
  0x99   : > { %v438_v17 = vpop.permute.xlu1 %437 }
  0x9b   : > { %v421_v9 = vpop.permute.xlu0 %420 }
  0x9c   : > { %v423_v10 = vmul.f32 %v421_v9, %v416_v8 }
  0x9f   : > { %v428_v11 = vpop.permute.xlu0 %427 }
  0xa0   : > { %v430_v12 = vadd.f32 %v428_v11, %v423_v10 }
  0xa2   : > { %v431_v13 = vmax.f32 %v430_v12, 0.0 }
  0xa4   : > { %v433_v14 = vpack.c.bf16 %v431_v13, %v431_v13  ;;  %v498_v29 = vpop.permute.xlu1 %497  ;;  %v506_v33 = vpop.permute.xlu0 %505 }
  0xa6   : > { %v446_v15 = vsel %vm444_vm1, %v433_v14, 0 }
  0xa7   : > { %825 = vmatpush3.bf16.msra.mxu0 %v446_v15 }
  0xa8   : > { %838 = vmatprep.subr.bf16.mxu0 %v1029_v3 }
  0xa9   : > { %v523_v41 = vpop.permute.xlu0 %522 }
  0xaa   : > { %827 = vmatmul.mubr.msk.bf16.vlgmr.msra.gmra.mrb[0].mxu0 %vm440_vm2, %v432_v16 }
  0xab   : > { %840 = vmatprep.mubr.msk.bf16.mxu0 %vm1030_vm0, %v1029_v3 }
 0x17d   : > { %v482_v18 = vpop.f32.mrb[0].mxu0 }
 0x17e   : > { %v483_v19 = vadd.f32 %v482_v18, %v438_v17  ;;  %v828_v20 = vpop.f32.mrb[1].mxu0 }
 0x17f   : > { %v485_v21 = vpop.f32.mrb[2].mxu0 }
 0x180   : > { %v488_v22 = vmax.f32 %v483_v19, 0.0  ;;  %v829_v23 = vpop.f32.mrb[3].mxu0 }
 0x182   : > { %493 = vrot.lane.b32.xlu1 %v488_v22, %s1032_s19  ;;  %s395_s19 = sand.u32 1, %s1002_s14  }
 0x183   : > { %s1223_s25 = scalar_lea.sflag [#allocation4], %s395_s19 }
 0x186   : > { %502 = vrot.lane.b32.xlu1 %v488_v22, %s1033_s23  ;;  %s786_s23 = sshll.u32 %s395_s19, 3 }
 0x187   : > { %s397_s30 = scalar_lea.vmem [#allocation3], %s786_s23  ;;  %s938_s23 = scalar_lea.vmem %s937_s3, 256 }
 0x188   : > { %s682_s12 = sshll.u32 %s397_s30, 4  ;;  %s1216_s12 = int_to_ptr.vmem [resolvable:$true] %s682_s12 }
 0x189   : > { %s932_s28 = scalar_lea.vmem %s1216_s12, 128  ;;  %p939_p4 = scmp.lt.s32.totalorder %s1216_s12, %s937_s3 }
 0x18a   : > { %593 = vperm.xlu1 %925, %v589_v24   ;;  %p933_p0 = scmp.ne.s32.totalorder %s1216_s12, %s932_s28  ;;  %p940_p5 = scmp.lt.s32.totalorder %s938_s23, %s932_s28 }
 0x18c   : > { %p934_p1 = pnand %p933_p0, %p1144_p3  ;;  %p941_p6 = por %p940_p5, %p939_p4 }
 0x18e   : > { %598 = vperm.xlu1 %925, %v590_v25   ;;  %p935_p2 = pneg %p934_p1 }
 0x190   : > { %p942_p7 = pnand %p941_p6, %p935_p2 }
 0x1f4   : > { %v494_v30 = vpop.permute.xlu1 %493 }
 0x1f5   : > { %v500_v31 = vsel %vm492_vm3, %v498_v29, %v494_v30 }
 0x1f6   : > { %v810_v32 = vpack.c.bf16 %v488_v22, %v500_v31 }
 0x1f8   : > { %811 = vst [vmem:[#allocation2] sm:$0xff] %v810_v32   ;;  %v503_v34 = vpop.permute.xlu1 %502 }
 0x1f9   : > { %v508_v35 = vsel %vm501_vm4, %v506_v33, %v503_v34 }
 0x1fa   : > { %v513_v36 = vpack.c.bf16 %v508_v35, %v508_v35 }
 0x1fc   : > { %514 = vst [vmem:[#allocation2 + $0x8] sm:$0xf] %v513_v36 }
 0x1ff   : > { %v928_v37 = vld [vmem:[#allocation2] sm:$0xff]  }
 0x200   : > { %584 = vst [vmem:[#allocation2 + $0x4] sm:$0xf] %v415_v7  ;;  %831 = vmatpush3.bf16.msra.mxu1 %v928_v37 }
 0x201   : > { %832 = vmatprep.subr.bf16.mxu1 %v1029_v3 }
 0x203   : > { %v929_v38 = vld [vmem:[#allocation2 + $0x8] ss:$0 sps:$4 sm:$0xff]  }
 0x204   : > { %v539_v39 = vsel %vm444_vm1, %v929_v38, 0 }
 0x205   : > { %833 = vmatpush3.bf16.msra.mxu1 %v539_v39 }
 0x208   : > { %835 = vmatmul.mubr.msk.bf16.vlgmr.msra.gmra.mrb[0].mxu1 %vm534_vm5, %v515_v40 }
 0x209   : > { %v594_v51 = vpop.permute.xlu1 %593 }
 0x20d   : > { %v599_v54 = vpop.permute.xlu1 %598 }
 0x2db   : > { %v575_v42 = vpop.f32.mrb[0].mxu1 }
 0x2dc   : > { %v576_v43 = vadd.f32 %v575_v42, %v523_v41  ;;  %v836_v44 = vpop.f32.mrb[1].mxu1 }
 0x2dd   : > { %v578_v45 = vpop.f32.mrb[2].mxu1 }
 0x2de   : > { %v581_v46 = vmax.f32 %v576_v43, 0.0  ;;  %v837_v47 = vpop.f32.mrb[3].mxu1 }
 0x2e0   : > { %v582_v48 = vpack.c.bf16 %v581_v46, %v581_v46 }
 0x2e2   : > { %583 = vst [vmem:[#allocation2] sm:$0xf] %v582_v48 }
 0x2e9   : > { %v930_v49 = vld [vmem:[#allocation2] sm:$0xff]  }
 0x2ea   : > { %839 = vmatpush3.bf16.msra.mxu0 %v930_v49 }
 0x2ed   : > { %841 = vmatmul.mubr.msk.bf16.vlgmr.msra.gmra.mrb[4].mxu0 %vm612_vm6, %v931_v50 }
 0x3c0   : > { %v650_v52 = vpop.f32.mrb[4].mxu0 }
 0x3c1   : > { %v842_v53 = vpop.f32.mrb[5].mxu0  ;;  %v651_v56 = vadd.f32 %v650_v52, %v594_v51 }
 0x3c2   : > { %v653_v55 = vpop.f32.mrb[6].mxu0 }
 0x3c3   : > { %v654_v57 = vadd.f32 %v653_v55, %v599_v54  ;;  %v843_v58 = vpop.f32.mrb[7].mxu0 }
 0x3c5   : > { %v815_v59 = vpack.c.bf16 %v654_v57, %v651_v56 }
 0x3c7   : > { %816 = vst [vmem:[%s397_s30] sm:$0xff] %v815_v59  }
 0x3c8   : > { %945 = shalt.err (!%p942_p7)
}
 0x3c9   : > { %s946_s19 = scalar_lea.hbm %s1221_s16, 128  ;;  %s950_s30 = scalar_lea.hbm %s1285_s10, 512 }
 0x3ca   : > { %p947_p9 = scmp.ne.s32.totalorder %s1221_s16, %s946_s19  ;;  %p951_p12 = scmp.lt.u32.totalorder %s1221_s16, %s1285_s10 }
 0x3cb   : > { %p952_p13 = scmp.lt.u32.totalorder %s950_s30, %s946_s19  ;;  %p954_p1 = scmp.lt.u32.totalorder %s946_s19, %s1221_s16 }
 0x3cc   : > { %p948_p10 = pnand %p947_p9, %p1144_p3 }
 0x3cd   : > { %p953_p0 = por %p952_p13, %p951_p12 }
 0x3ce   : > { %p949_p11 = pneg %p948_p10 }
 0x3cf   : > { %p955_p2 = por %p954_p1, %p953_p0 }
 0x3d1   : > { %p956_p4 = pnand %p955_p2, %p949_p11 }
 0x3d3   : > { %959 = shalt.err (!%p956_p4)
}
 0x3d4   : > { %s1035_s17 = smov 64   ;;  %s1036_s28 = smov 128  }
 0x3d5   : > { %s1037_s2 = smov 4  }
 0x3d6   : > { %844 = dma.vmem_to_hbm [thread:$0]  (%p1144_p3), %s1216_s12, 128, %s1221_s16, %s1223_s25, %s1035_s17, %s1036_s28, %s1037_s2  }
 0x3d7 PF: > { %p850_p5 = scmp.ge.s32.totalorder %s1026_s20, 2  ;;  %s697_s3 = sand.u32 1, %s998_s13  }
 0x3d8   : > { %s698_s23 = scalar_lea.sflag [#allocation4], %s697_s3 }
 0x3d9   : > { %p847_p6 = pnand %p850_p5, %p1153_p8 }
 0x3db   : > { %993 = dma.done.wait (!%p847_p6), %s698_s23, 128  }
 0x3dc   : > { %995 = vsyncadd (!%p847_p6), %s698_s23, 4294967168  ;;  %s23_s20 = sadd.s32 1, %s1026_s20   ;;  %s1298_s17 = sld [smem:[#allocation6_spill]] }
 0x3dd   : > { %p20_p7 = scmp.ge.s32.totalorder %s23_s20, 6   ;;  %s1299_s26 = sld [smem:[#allocation7_spill]] }
 0x3de   : > { %s1300_s19 = sld [smem:[#allocation8_spill]]  ;;  %s1301_s13 = smov %s1002_s14 }
 0x3df   : > { %s1302_s14 = smov %s1006_s15  ;;  %s1303_s15 = smov %s1162_s11 }
 0x3e0   : > { %s1304_s16 = smov %s1018_s18  ;;  %22 = sbr.rel (!%p20_p7) target bundleno = 8 (0x8), region = 98 }
 0x3e3   : > { %s1305_s18 = smov %s1299_s26 }
 0x3e7   :  { %703 = vsyncpa [#allocation4], 1 }
 0x3e8   :  { %705 = vsyncpa [#allocation4 + $0x1], 1 }

</bundles_post_ra>
